<compile_context>
chip_gen: v6e
topology: v6e:2x2x1
jax: 0.10.0
libtpu: 0.0.40
codegen_flags: <defaults>
</compile_context>

<pallas_src>
import math

import jax
import jax.numpy as jnp
from jax.experimental import pallas as pl
from jax.experimental.pallas import tpu as pltpu


def _make_mlp_kernel(n_linear, matmul_dtype, approx_sigmoid):
    """Kernel refs: (x, w0, b0, ..., w_{n-1}, b_{n-1}, out).

    Batch-on-lanes layout:
      x_ref : [in_dim, batch_tile]
      w_i   : [fan_out, fan_in]   (PyTorch layout; kernel does W @ h)
      b_i   : [fan_out, 1]        (broadcasts over the lane/batch axis)
      o_ref : [out_dim, batch_tile]
    """
    def kernel(*refs):
        x_ref = refs[0]
        o_ref = refs[-1]
        h = x_ref[...].astype(jnp.float32)
        for i in range(n_linear):
            w = refs[1 + 2 * i][...]
            b = refs[2 + 2 * i][...]
            h = jnp.dot(w.astype(matmul_dtype), h.astype(matmul_dtype),
                        preferred_element_type=jnp.float32) + b
            if i < n_linear - 1:
                h = jnp.tanh(h)
        if approx_sigmoid:
            # sigmoid(x) = 1 / (1 + exp(-x)); exp and approx reciprocal both
            # run on the EUP slot, keeping the VPU path free.
            h = pl.reciprocal(1.0 + jnp.exp(-h), approx=True)
        else:
            h = jax.nn.sigmoid(h)
        o_ref[...] = h.astype(o_ref.dtype)
    return kernel


def _pick_batch_tile(batch):
    # Small/medium batches: one grid step, whole batch resident. Activations
    # are at most 64 x batch f32 -> far below even v7x's 32 MiB scoped VMEM.
    if batch <= 4096:
        return batch
    # Large batches: 2048 is a multiple of 256 (v6e/v7x MXU) and 128 (v5e MXU)
    # and keeps the grid long enough that v7x's 2 TensorCores both get work.
    return 2048


def state2lidar_forward(x, weights, biases, *, batch_tile=None,
                        matmul_dtype=jnp.float32, approx_sigmoid=False):
    """Forward pass of State2Lidar.

    x         : [B, in_dim]
    weights[i]: [fan_out, fan_in]   (PyTorch nn.Linear layout)
    biases[i] : [fan_out]
    returns   : [B, out_dim]
    """
    B, in_dim = x.shape
    n_linear = len(weights)
    out_dim = weights[-1].shape[0]
    if batch_tile is None:
        batch_tile = _pick_batch_tile(B)
    grid = (pl.cdiv(B, batch_tile),)

    # Batch on the 128-lane axis; feature widths (3/32/32/64, all < 128) sit on
    # the sublane axis so loads, vregs and the output store are lane-dense.
    xt = x.T                                     # [in_dim, B]
    bcols = [b.reshape(-1, 1) for b in biases]   # [fan_out, 1]

    in_specs = [pl.BlockSpec((in_dim, batch_tile), lambda i: (0, i))]
    args = [xt]
    for w, b in zip(weights, bcols):
        # Full-array blocks with a constant index_map: params stay
        # VMEM-resident across all grid steps, no re-DMA.
        in_specs.append(pl.BlockSpec(w.shape, lambda i: (0, 0)))
        in_specs.append(pl.BlockSpec(b.shape, lambda i: (0, 0)))
        args += [w, b]

    # Advisory cost estimate for XLA's scheduler.
    flops = sum(2 * B * w.shape[0] * w.shape[1] for w in weights)
    transcendentals = sum(B * w.shape[0] for w in weights[:-1]) + B * out_dim
    bytes_accessed = (int(x.size) + B * out_dim) * x.dtype.itemsize
    bytes_accessed += sum(int(w.size) * w.dtype.itemsize for w in weights)
    bytes_accessed += sum(int(b.size) * b.dtype.itemsize for b in biases)

    out_t = pl.pallas_call(
        _make_mlp_kernel(n_linear, matmul_dtype, approx_sigmoid),
        out_shape=jax.ShapeDtypeStruct((out_dim, B), x.dtype),
        grid=grid,
        in_specs=in_specs,
        out_specs=pl.BlockSpec((out_dim, batch_tile), lambda i: (0, i)),
        compiler_params=pltpu.CompilerParams(
            dimension_semantics=("parallel",)),
        cost_estimate=pl.CostEstimate(
            flops=int(flops),
            transcendentals=int(transcendentals),
            bytes_accessed=int(bytes_accessed)),
    )(*args)
    return out_t.T


def init_params(key, in_dim, out_dim, layer_sizes):
    """PyTorch-style init: uniform +-1/sqrt(fan_in); weights in [out, in]."""
    dims = [in_dim] + list(layer_sizes) + [out_dim]
    weights, biases = [], []
    for fi, fo in zip(dims[:-1], dims[1:]):
        key, kw, kb = jax.random.split(key, 3)
        bound = 1.0 / math.sqrt(fi)
        weights.append(jax.random.uniform(kw, (fo, fi), jnp.float32, -bound, bound))
        biases.append(jax.random.uniform(kb, (fo,), jnp.float32, -bound, bound))
    return weights, biases, key


if __name__ == "__main__":
    # Shapes consistent with the module: 3-element state -> 64-beam lidar scan.
    in_dim = 3
    out_dim = 64
    num_hidden_layers = 2
    layer_sizes = [32, 32]          # len == num_hidden_layers
    batch = 16

    key = jax.random.PRNGKey(0)
    weights, biases, key = init_params(key, in_dim, out_dim, layer_sizes)
    key, kx = jax.random.split(key)
    x = jax.random.normal(kx, (batch, in_dim), jnp.float32)

    # Pure-JAX reference of the same forward pass.
    h = x
    for i, (w, b) in enumerate(zip(weights, biases)):
        h = h @ w.T + b
        if i < len(weights) - 1:
            h = jnp.tanh(h)
    ref = jax.nn.sigmoid(h)

    # Exact path: f32 matmuls, exact sigmoid (tight correctness check).
    y = state2lidar_forward(x, weights, biases)
    jax.block_until_ready(y)
    assert y.shape == (batch, out_dim)
    assert jnp.allclose(y, ref, atol=1e-5), "Pallas kernel mismatch vs reference"

    # Fast path (v6e/v7x advice): bf16 matmul operands + approx-recip sigmoid.
    y_fast = state2lidar_forward(x, weights, biases,
                                 matmul_dtype=jnp.bfloat16,
                                 approx_sigmoid=True)
    jax.block_until_ready(y_fast)
    assert jnp.allclose(y_fast, ref, atol=5e-2), "Pallas fast-path mismatch"

    print("KERNEL_OK")
</pallas_src>

<mosaic_0001>
module attributes {stable_mosaic.version = 11 : i64} {
  func.func @kernel(%arg0: i32, %arg1: memref<3x16xf32, #tpu.memory_space<vmem>>, %arg2: memref<32x3xf32, #tpu.memory_space<vmem>>, %arg3: memref<32x1xf32, #tpu.memory_space<vmem>>, %arg4: memref<32x32xf32, #tpu.memory_space<vmem>>, %arg5: memref<32x1xf32, #tpu.memory_space<vmem>>, %arg6: memref<64x32xf32, #tpu.memory_space<vmem>>, %arg7: memref<64x1xf32, #tpu.memory_space<vmem>>, %arg8: memref<64x16xf32, #tpu.memory_space<vmem>>) attributes {dimension_semantics = [#tpu.dimension_semantics<parallel>], iteration_bounds = array<i64: 1>, scalar_prefetch = 0 : i64, scratch_operands = 0 : i64, tpu.core_type = #tpu.core_type<tc>, window_params = [{transform_indices = @transform_0, window_bounds = array<i64: 3, 16>}, {pipeline_mode = #tpu.pipeline_mode<synchronous>, transform_indices = @transform_1, window_bounds = array<i64: 32, 3>}, {pipeline_mode = #tpu.pipeline_mode<synchronous>, transform_indices = @transform_2, window_bounds = array<i64: 32, 1>}, {pipeline_mode = #tpu.pipeline_mode<synchronous>, transform_indices = @transform_3, window_bounds = array<i64: 32, 32>}, {pipeline_mode = #tpu.pipeline_mode<synchronous>, transform_indices = @transform_4, window_bounds = array<i64: 32, 1>}, {pipeline_mode = #tpu.pipeline_mode<synchronous>, transform_indices = @transform_5, window_bounds = array<i64: 64, 32>}, {pipeline_mode = #tpu.pipeline_mode<synchronous>, transform_indices = @transform_6, window_bounds = array<i64: 64, 1>}, {transform_indices = @transform_7, window_bounds = array<i64: 64, 16>}]} {
    %c0 = arith.constant 0 : index
    %c0_0 = arith.constant 0 : index
    %0 = vector.load %arg1[%c0, %c0_0] : memref<3x16xf32, #tpu.memory_space<vmem>>, vector<3x16xf32>
    %c0_1 = arith.constant 0 : index
    %c0_2 = arith.constant 0 : index
    %1 = vector.load %arg2[%c0_1, %c0_2] : memref<32x3xf32, #tpu.memory_space<vmem>>, vector<32x3xf32>
    %c0_3 = arith.constant 0 : index
    %c0_4 = arith.constant 0 : index
    %2 = vector.load %arg3[%c0_3, %c0_4] : memref<32x1xf32, #tpu.memory_space<vmem>>, vector<32x1xf32>
    %cst = arith.constant dense<0.000000e+00> : vector<32x16xf32>
    %3 = tpu.matmul %1, %0, %cst {dimension_numbers = #tpu.dot_dimension_numbers<[1], [0], [0], [1], [0, 0, 1, 1], [], []>} : vector<32x3xf32>, vector<3x16xf32>, vector<32x16xf32> -> vector<32x16xf32>
    %4 = vector.broadcast %2 : vector<32x1xf32> to vector<32x16xf32>
    %5 = arith.addf %3, %4 : vector<32x16xf32>
    %6 = math.tanh %5 : vector<32x16xf32>
    %c0_5 = arith.constant 0 : index
    %c0_6 = arith.constant 0 : index
    %7 = vector.load %arg4[%c0_5, %c0_6] : memref<32x32xf32, #tpu.memory_space<vmem>>, vector<32x32xf32>
    %c0_7 = arith.constant 0 : index
    %c0_8 = arith.constant 0 : index
    %8 = vector.load %arg5[%c0_7, %c0_8] : memref<32x1xf32, #tpu.memory_space<vmem>>, vector<32x1xf32>
    %cst_9 = arith.constant dense<0.000000e+00> : vector<32x16xf32>
    %9 = tpu.matmul %7, %6, %cst_9 {dimension_numbers = #tpu.dot_dimension_numbers<[1], [0], [0], [1], [0, 0, 1, 1], [], []>} : vector<32x32xf32>, vector<32x16xf32>, vector<32x16xf32> -> vector<32x16xf32>
    %10 = vector.broadcast %8 : vector<32x1xf32> to vector<32x16xf32>
    %11 = arith.addf %9, %10 : vector<32x16xf32>
    %12 = math.tanh %11 : vector<32x16xf32>
    %c0_10 = arith.constant 0 : index
    %c0_11 = arith.constant 0 : index
    %13 = vector.load %arg6[%c0_10, %c0_11] : memref<64x32xf32, #tpu.memory_space<vmem>>, vector<64x32xf32>
    %c0_12 = arith.constant 0 : index
    %c0_13 = arith.constant 0 : index
    %14 = vector.load %arg7[%c0_12, %c0_13] : memref<64x1xf32, #tpu.memory_space<vmem>>, vector<64x1xf32>
    %cst_14 = arith.constant dense<0.000000e+00> : vector<64x16xf32>
    %15 = tpu.matmul %13, %12, %cst_14 {dimension_numbers = #tpu.dot_dimension_numbers<[1], [0], [0], [1], [0, 0, 1, 1], [], []>} : vector<64x32xf32>, vector<32x16xf32>, vector<64x16xf32> -> vector<64x16xf32>
    %16 = vector.broadcast %14 : vector<64x1xf32> to vector<64x16xf32>
    %17 = arith.addf %15, %16 : vector<64x16xf32>
    %18 = arith.negf %17 : vector<64x16xf32>
    %19 = math.exp %18 : vector<64x16xf32>
    %cst_15 = arith.constant 1.000000e+00 : f32
    %20 = vector.broadcast %cst_15 : f32 to vector<64x16xf32>
    %21 = arith.addf %20, %19 : vector<64x16xf32>
    %22 = arith.divf %20, %21 : vector<64x16xf32>
    %c0_16 = arith.constant 0 : index
    %c0_17 = arith.constant 0 : index
    %23 = vector.load %arg8[%c0_16, %c0_17] : memref<64x16xf32, #tpu.memory_space<vmem>>, vector<64x16xf32>
    tpu.vector_store %arg8[%c0_16, %c0_17], %22 {strides = array<i32>} : memref<64x16xf32, #tpu.memory_space<vmem>>, vector<64x16xf32>,
    return
  }
  func.func @transform_0(%arg0: i32) -> (i32, i32) {
    %c0_i32 = arith.constant 0 : i32
    %c0_i32_0 = arith.constant 0 : i32
    return %c0_i32, %arg0 : i32, i32
  }
  func.func @transform_1(%arg0: i32) -> (i32, i32) {
    %c0_i32 = arith.constant 0 : i32
    %c0_i32_0 = arith.constant 0 : i32
    %c0_i32_1 = arith.constant 0 : i32
    return %c0_i32, %c0_i32_0 : i32, i32
  }
  func.func @transform_2(%arg0: i32) -> (i32, i32) {
    %c0_i32 = arith.constant 0 : i32
    %c0_i32_0 = arith.constant 0 : i32
    %c0_i32_1 = arith.constant 0 : i32
    return %c0_i32, %c0_i32_0 : i32, i32
  }
  func.func @transform_3(%arg0: i32) -> (i32, i32) {
    %c0_i32 = arith.constant 0 : i32
    %c0_i32_0 = arith.constant 0 : i32
    %c0_i32_1 = arith.constant 0 : i32
    return %c0_i32, %c0_i32_0 : i32, i32
  }
  func.func @transform_4(%arg0: i32) -> (i32, i32) {
    %c0_i32 = arith.constant 0 : i32
    %c0_i32_0 = arith.constant 0 : i32
    %c0_i32_1 = arith.constant 0 : i32
    return %c0_i32, %c0_i32_0 : i32, i32
  }
  func.func @transform_5(%arg0: i32) -> (i32, i32) {
    %c0_i32 = arith.constant 0 : i32
    %c0_i32_0 = arith.constant 0 : i32
    %c0_i32_1 = arith.constant 0 : i32
    return %c0_i32, %c0_i32_0 : i32, i32
  }
  func.func @transform_6(%arg0: i32) -> (i32, i32) {
    %c0_i32 = arith.constant 0 : i32
    %c0_i32_0 = arith.constant 0 : i32
    %c0_i32_1 = arith.constant 0 : i32
    return %c0_i32, %c0_i32_0 : i32, i32
  }
  func.func @transform_7(%arg0: i32) -> (i32, i32) {
    %c0_i32 = arith.constant 0 : i32
    %c0_i32_0 = arith.constant 0 : i32
    return %c0_i32, %arg0 : i32, i32
  }
}

</mosaic_0001>

<bundles_post_ra>
// kernel: tpu_custom_call.1
= control target key start
LH: loop header
LB: loop body
LE: loop exit
PB: predicated region body
PF: predicated region fallthrough
CT: control target
= control target key end

     0   :  { %vm68_vm0 = vcmask 1042432   ;;  %vm55_vm1 = vcmask 23552   ;;  %v688_v3 = vmov 0   ;;  %vm189_vm2 = vcmask 261120   ;;  %s876_s0 = inlined_call_operand.vmem [shape: f32[3,16], index: 0, kind: input, shape index: {}]   ;;  %s877_s1 = inlined_call_operand.vmem [shape: f32[32,3], index: 1, kind: input, shape index: {}]   ;;  %s878_s2 = inlined_call_operand.vmem [shape: f32[32,1], index: 2, kind: input, shape index: {}]   ;;  %s879_s4 = inlined_call_operand.vmem [shape: f32[32,1], index: 4, kind: input, shape index: {}]   ;;  %s880_s6 = inlined_call_operand.vmem [shape: f32[64,1], index: 6, kind: input, shape index: {}]   ;;  %s881_s3 = inlined_call_operand.vmem [shape: f32[32,32], index: 3, kind: input, shape index: {}]   ;;  %s882_s5 = inlined_call_operand.vmem [shape: f32[64,32], index: 5, kind: input, shape index: {}]   ;;  %s883_s7 = inlined_call_operand.vmem [shape: f32[64,16], index: 7, kind: output, shape index: {}]  }
   0x1   :  { %v26_v0 = vld [vmem:[%s876_s0] sm:$0x7]  ;;  %v28_v2 = vld [vmem:[%s877_s1 + $0x8] sm:$0xff]  ;;  %638 = vset.pattern.permute.xlu0 %v688_v3  ;;  %639 = vset.pattern.permute.xlu1 %v688_v3  ;;  %v29_v4 = vld [vmem:[%s877_s1 + $0x10] sm:$0xff]  ;;  %vm524_vm3 = vcmask 130048  }
   0x2   :  { %v27_v1 = vld [vmem:[%s877_s1] sm:$0xff]  ;;  %587 = vmatprep.subr.msk.mxu0 %vm68_vm0, %v26_v0  ;;  %v34_v5 = vld [vmem:[%s878_s2 + $0x18] sm:$0xff]  ;;  %v32_v6 = vld [vmem:[%s878_s2 + $0x8] sm:$0xff] }
   0x3   :  { %589 = vmatprep.mubr.msk.f32.mxu0 %vm55_vm1, %v27_v1  ;;  %588 = vmatpush3.msk.msra.mxu0 %vm68_vm0, %v26_v0  ;;  %v33_v7 = vld [vmem:[%s878_s2 + $0x10] sm:$0xff]  ;;  %v30_v8 = vld [vmem:[%s877_s1 + $0x18] sm:$0xff]  ;;  %v31_v9 = vld [vmem:[%s878_s2] sm:$0xff] }
   0x4   :  { %52 = vperm.xlu0 %638, %v34_v5   ;;  %590 = vmatmul.mubr.msk.f32.vlgmr.msra.gmra.mxu0 %vm55_vm1, %v28_v2  ;;  %v168_v10 = vld [vmem:[%s879_s4 + $0x18] sm:$0xff]  ;;  %v167_v11 = vld [vmem:[%s879_s4 + $0x10] sm:$0xff]  ;;  %v166_v12 = vld [vmem:[%s879_s4 + $0x8] sm:$0xff] }
   0x5   :  { %42 = vperm.xlu1 %639, %v32_v6   ;;  %592 = vmatprep.mubr.msk.f32.mxu0 %vm55_vm1, %v29_v4  ;;  %v165_v13 = vld [vmem:[%s879_s4] sm:$0xff]  ;;  %v300_v15 = vld [vmem:[%s880_s6 + $0x8] sm:$0xff]  ;;  %v301_v16 = vld [vmem:[%s880_s6 + $0x10] sm:$0xff] }
   0x6   :  { %v299_v14 = vld [vmem:[%s880_s6] sm:$0xff]  ;;  %v302_v17 = vld [vmem:[%s880_s6 + $0x18] sm:$0xff]  ;;  %v304_v19 = vld [vmem:[%s880_s6 + $0x28] sm:$0xff] }
   0x7   :  { %v303_v18 = vld [vmem:[%s880_s6 + $0x20] sm:$0xff]  ;;  %v305_v20 = vld [vmem:[%s880_s6 + $0x30] sm:$0xff]  ;;  %v306_v21 = vld [vmem:[%s880_s6 + $0x38] sm:$0xff] }
   0x8   :  { %47 = vperm.xlu0 %638, %v33_v7   ;;  %593 = vmatmul.mubr.msk.f32.gmra.mxu0 %vm55_vm1, %v30_v8  ;;  %v161_v22 = vld [vmem:[%s881_s3] sm:$0xff]  ;;  %v162_v39 = vld [vmem:[%s881_s3 + $0x8] sm:$0xff]  ;;  %v163_v40 = vld [vmem:[%s881_s3 + $0x10] sm:$0xff] }
   0x9   :  { %37 = vperm.xlu1 %639, %v31_v9   ;;  %603 = vmatprep.mubr.msk.f32.mxu1 %vm189_vm2, %v161_v22  ;;  %v164_v41 = vld [vmem:[%s881_s3 + $0x18] sm:$0xff]  ;;  %v291_v42 = vld [vmem:[%s882_s5] sm:$0xff]  ;;  %v297_v43 = vld [vmem:[%s882_s5 + $0x30] sm:$0xff] }
   0xa   :  { %617 = vmatprep.mubr.msk.f32.mxu0 %vm189_vm2, %v291_v42  ;;  %v292_v60 = vld [vmem:[%s882_s5 + $0x8] sm:$0xff]  ;;  %v298_v61 = vld [vmem:[%s882_s5 + $0x38] sm:$0xff]  ;;  %v293_v62 = vld [vmem:[%s882_s5 + $0x10] sm:$0xff] }
   0xb   :  { %v294_v63 = vld [vmem:[%s882_s5 + $0x18] sm:$0xff]  ;;  %v295_v0 = vld [vmem:[%s882_s5 + $0x20] sm:$0xff]  ;;  %v296_v1 = vld [vmem:[%s882_s5 + $0x28] sm:$0xff] }
   0xc   :  { %186 = vperm.xlu0 %638, %v168_v10  }
   0xd   :  { %181 = vperm.xlu1 %639, %v167_v11  }
  0x10   :  { %176 = vperm.xlu0 %638, %v166_v12  }
  0x11   :  { %171 = vperm.xlu1 %639, %v165_v13  }
  0x14   :  { %309 = vperm.xlu0 %638, %v299_v14  }
  0x15   :  { %314 = vperm.xlu1 %639, %v300_v15  }
  0x18   :  { %319 = vperm.xlu0 %638, %v301_v16  }
  0x19   :  { %324 = vperm.xlu1 %639, %v302_v17  }
  0x1c   :  { %329 = vperm.xlu0 %638, %v303_v18  }
  0x1d   :  { %334 = vperm.xlu1 %639, %v304_v19  }
  0x20   :  { %339 = vperm.xlu0 %638, %v305_v20  }
  0x21   :  { %344 = vperm.xlu1 %639, %v306_v21  }
  0x7f   :  { %v53_v23 = vpop.permute.xlu0 %52 }
  0x80   :  { %v43_v25 = vpop.permute.xlu1 %42 }
  0x83   :  { %v48_v29 = vpop.permute.xlu0 %47 }
  0x84   :  { %v38_v33 = vpop.permute.xlu1 %37 }
  0x87   :  { %v187_v44 = vpop.permute.xlu0 %186 }
  0x88   :  { %v182_v46 = vpop.permute.xlu1 %181 }
  0x8b   :  { %v177_v50 = vpop.permute.xlu0 %176 }
  0x8c   :  { %v172_v54 = vpop.permute.xlu1 %171 }
  0x8f   :  { %v310_v3 = vpop.permute.xlu0 %309 }
  0x90   :  { %v315_v2 = vpop.permute.xlu1 %314 }
  0x93   :  { %v320_v5 = vpop.permute.xlu0 %319 }
  0x94   :  { %v325_v4 = vpop.permute.xlu1 %324 }
  0x97   :  { %v330_v7 = vpop.permute.xlu0 %329 }
  0x98   :  { %v335_v6 = vpop.permute.xlu1 %334 }
  0x9b   :  { %v340_v11 = vpop.permute.xlu0 %339 }
  0x9c   :  { %v345_v8 = vpop.permute.xlu1 %344 }
  0xc4   :  { %v591_v24 = vpop.f32.mrf.mxu0 }
  0xc5   :  { %v144_v31 = vadd.f32 %v591_v24, %v43_v25 }
  0xc6   :  { %v138_v26 = vpop.f32.mrf.mxu0 }
  0xc7   :  { %v139_v34 = vadd.f32 %v138_v26, %v38_v33 }
  0xc8   :  { %v594_v27 = vpop.f32.mrf.mxu0 }
  0xc9   :  { %v154_v28 = vadd.f32 %v594_v27, %v53_v23 }
  0xca   :  { %v148_v30 = vpop.f32.mrf.mxu0 }
  0xcb   :  { %640 = vtanh.f32 %v154_v28  ;;  %v149_v32 = vadd.f32 %v148_v30, %v48_v29 }
  0xcd   :  { %642 = vtanh.f32 %v149_v32 }
  0xce   :  { %644 = vtanh.f32 %v144_v31 }
  0xcf   :  { %646 = vtanh.f32 %v139_v34 }
  0xd8   :  { %v641_v35 = vpop.eup %640 }
  0xd9   :  { %595 = vmatprep.subr.mxu1 %v641_v35 }
  0xda   :  { %v643_v36 = vpop.eup %642  ;;  %596 = vmatpush3.msra.mxu1 %v641_v35 }
  0xdb   :  { %597 = vmatprep.subr.mxu1 %v643_v36  ;;  %v645_v37 = vpop.eup %644 }
  0xdc   :  { %598 = vmatpush3.msra.mxu1 %v643_v36  ;;  %v647_v38 = vpop.eup %646 }
  0xdd   :  { %599 = vmatprep.subr.mxu1 %v645_v37 }
  0xde   :  { %600 = vmatpush3.msra.mxu1 %v645_v37 }
  0xdf   :  { %601 = vmatprep.subr.mxu1 %v647_v38 }
  0xe0   :  { %602 = vmatpush3.msra.mxu1 %v647_v38 }
  0xe1   :  { %604 = vmatmul.mubr.msk.f32.vlgmr.msra.gmra.mxu1 %vm189_vm2, %v162_v39 }
  0xe2   :  { %606 = vmatprep.mubr.msk.f32.mxu1 %vm189_vm2, %v163_v40 }
  0xe5   :  { %607 = vmatmul.mubr.msk.f32.gmra.mxu1 %vm189_vm2, %v164_v41 }
  0xe6   :  { %626 = vmatprep.mubr.msk.f32.mxu1 %vm189_vm2, %v297_v43 }
 0x1a1   :  { %v605_v45 = vpop.f32.mrf.mxu1 }
 0x1a2   :  { %v274_v52 = vadd.f32 %v605_v45, %v177_v50 }
 0x1a3   :  { %v268_v47 = vpop.f32.mrf.mxu1 }
 0x1a4   :  { %v269_v55 = vadd.f32 %v268_v47, %v172_v54 }
 0x1a5   :  { %v608_v48 = vpop.f32.mrf.mxu1 }
 0x1a6   :  { %v284_v49 = vadd.f32 %v608_v48, %v187_v44 }
 0x1a7   :  { %v278_v51 = vpop.f32.mrf.mxu1 }
 0x1a8   :  { %648 = vtanh.f32 %v284_v49  ;;  %v279_v53 = vadd.f32 %v278_v51, %v182_v46 }
 0x1aa   :  { %650 = vtanh.f32 %v279_v53 }
 0x1ab   :  { %652 = vtanh.f32 %v274_v52 }
 0x1ac   :  { %654 = vtanh.f32 %v269_v55 }
 0x1b5   :  { %v649_v56 = vpop.eup %648 }
 0x1b6   :  { %609 = vmatprep.subr.mxu0 %v649_v56  ;;  %629 = vmatprep.subr.mxu1 %v649_v56 }
 0x1b7   :  { %v651_v57 = vpop.eup %650  ;;  %610 = vmatpush3.msra.mxu0 %v649_v56  ;;  %633 = vmatpush3.msra.mxu1 %v649_v56 }
 0x1b8   :  { %611 = vmatprep.subr.mxu0 %v651_v57  ;;  %630 = vmatprep.subr.mxu1 %v651_v57  ;;  %v653_v58 = vpop.eup %652 }
 0x1b9   :  { %612 = vmatpush3.msra.mxu0 %v651_v57  ;;  %634 = vmatpush3.msra.mxu1 %v651_v57  ;;  %v655_v59 = vpop.eup %654 }
 0x1ba   :  { %613 = vmatprep.subr.mxu0 %v653_v58  ;;  %631 = vmatprep.subr.mxu1 %v653_v58 }
 0x1bb   :  { %614 = vmatpush3.msra.mxu0 %v653_v58  ;;  %635 = vmatpush3.msra.mxu1 %v653_v58 }
 0x1bc   :  { %615 = vmatprep.subr.mxu0 %v655_v59  ;;  %632 = vmatprep.subr.mxu1 %v655_v59 }
 0x1bd   :  { %616 = vmatpush3.msra.mxu0 %v655_v59  ;;  %636 = vmatpush3.msra.mxu1 %v655_v59 }
 0x1be   :  { %618 = vmatmul.mubr.msk.f32.vlgmr.msra.gmra.mxu0 %vm189_vm2, %v292_v60  ;;  %627 = vmatmul.mubr.msk.f32.vlgmr.msra.gmra.mxu1 %vm189_vm2, %v298_v61 }
 0x1bf   :  { %620 = vmatprep.mubr.msk.f32.mxu0 %vm189_vm2, %v293_v62 }
 0x1c2   :  { %621 = vmatmul.mubr.msk.f32.gmra.mxu0 %vm189_vm2, %v294_v63 }
 0x1c3   :  { %623 = vmatprep.mubr.msk.f32.mxu0 %vm189_vm2, %v295_v0 }
 0x1c6   :  { %624 = vmatmul.mubr.msk.f32.gmra.mxu0 %vm189_vm2, %v296_v1 }
 0x27e   :  { %v619_v9 = vpop.f32.mrf.mxu0  ;;  %v628_v10 = vpop.f32.mrf.mxu1 }
 0x27f   :  { %v443_v12 = vadd.f32 %v619_v9, %v315_v2  ;;  %v473_v13 = vadd.f32 %v628_v10, %v345_v8 }
 0x280   :  { %v437_v14 = vpop.f32.mrf.mxu0  ;;  %v467_v15 = vpop.f32.mrf.mxu1 }
 0x281   :  { %v555_v16 = vmul.f32 -1.442695, %v443_v12  ;;  %v561_v17 = vmul.f32 -1.442695, %v473_v13  ;;  %v438_v18 = vadd.f32 %v437_v14, %v310_v3  ;;  %v468_v19 = vadd.f32 %v467_v15, %v340_v11 }
 0x282   :  { %v622_v20 = vpop.f32.mrf.mxu0 }
 0x283   :  { %656 = vpow2.f32 %v555_v16  ;;  %v554_v21 = vmul.f32 -1.442695, %v438_v18  ;;  %v560_v22 = vmul.f32 -1.442695, %v468_v19  ;;  %v453_v23 = vadd.f32 %v622_v20, %v325_v4 }
 0x284   :  { %658 = vpow2.f32 %v561_v17  ;;  %v447_v24 = vpop.f32.mrf.mxu0 }
 0x285   :  { %660 = vpow2.f32 %v554_v21  ;;  %v557_v25 = vmul.f32 -1.442695, %v453_v23  ;;  %v448_v26 = vadd.f32 %v447_v24, %v320_v5 }
 0x286   :  { %662 = vpow2.f32 %v560_v22  ;;  %v625_v27 = vpop.f32.mrf.mxu0 }
 0x287   :  { %664 = vpow2.f32 %v557_v25  ;;  %v556_v28 = vmul.f32 -1.442695, %v448_v26  ;;  %v463_v29 = vadd.f32 %v625_v27, %v335_v6 }
 0x288   :  { %v457_v30 = vpop.f32.mrf.mxu0 }
 0x289   :  { %666 = vpow2.f32 %v556_v28  ;;  %v559_v31 = vmul.f32 -1.442695, %v463_v29  ;;  %v458_v32 = vadd.f32 %v457_v30, %v330_v7 }
 0x28b   :  { %668 = vpow2.f32 %v559_v31  ;;  %v558_v33 = vmul.f32 -1.442695, %v458_v32 }
 0x28d   :  { %670 = vpow2.f32 %v558_v33 }
 0x290   :  { %v657_v34 = vpop.eup %656 }
 0x291   :  { %v659_v35 = vpop.eup %658  ;;  %v501_v36 = vadd.f32 1.0, %v657_v34 }
 0x292   :  { %v661_v37 = vpop.eup %660  ;;  %v507_v38 = vadd.f32 1.0, %v659_v35 }
 0x293   :  { %v663_v39 = vpop.eup %662  ;;  %672 = vrcp.f32 %v501_v36  ;;  %v500_v40 = vadd.f32 1.0, %v661_v37 }
 0x294   :  { %v665_v41 = vpop.eup %664  ;;  %674 = vrcp.f32 %v507_v38  ;;  %v506_v42 = vadd.f32 1.0, %v663_v39 }
 0x295   :  { %676 = vrcp.f32 %v500_v40  ;;  %v503_v43 = vadd.f32 1.0, %v665_v41 }
 0x296   :  { %v667_v44 = vpop.eup %666  ;;  %678 = vrcp.f32 %v506_v42 }
 0x297   :  { %680 = vrcp.f32 %v503_v43  ;;  %v502_v45 = vadd.f32 1.0, %v667_v44 }
 0x298   :  { %v669_v46 = vpop.eup %668 }
 0x299   :  { %682 = vrcp.f32 %v502_v45  ;;  %v505_v47 = vadd.f32 1.0, %v669_v46 }
 0x29a   :  { %v671_v48 = vpop.eup %670 }
 0x29b   :  { %684 = vrcp.f32 %v505_v47  ;;  %v504_v49 = vadd.f32 1.0, %v671_v48 }
 0x29d   :  { %686 = vrcp.f32 %v504_v49 }
 0x2a0   :  { %v673_v50 = vpop.eup %672 }
 0x2a1   :  { %v675_v51 = vpop.eup %674  ;;  %526 = vst.msk [vmem:[%s883_s7 + $0x8] sm:$0xff] %vm524_vm3, %v673_v50 }
 0x2a2   :  { %v677_v52 = vpop.eup %676  ;;  %532 = vst.msk [vmem:[%s883_s7 + $0x38] sm:$0xff] %vm524_vm3, %v675_v51 }
 0x2a3   :  { %v679_v53 = vpop.eup %678  ;;  %525 = vst.msk [vmem:[%s883_s7] sm:$0xff] %vm524_vm3, %v677_v52 }
 0x2a4   :  { %v681_v54 = vpop.eup %680  ;;  %531 = vst.msk [vmem:[%s883_s7 + $0x30] sm:$0xff] %vm524_vm3, %v679_v53 }
 0x2a5   :  { %528 = vst.msk [vmem:[%s883_s7 + $0x18] sm:$0xff] %vm524_vm3, %v681_v54 }
 0x2a6   :  { %v683_v55 = vpop.eup %682 }
 0x2a7   :  { %527 = vst.msk [vmem:[%s883_s7 + $0x10] sm:$0xff] %vm524_vm3, %v683_v55 }
 0x2a8   :  { %v685_v56 = vpop.eup %684 }
 0x2a9   :  { %530 = vst.msk [vmem:[%s883_s7 + $0x28] sm:$0xff] %vm524_vm3, %v685_v56 }
 0x2aa   :  { %v687_v57 = vpop.eup %686 }
 0x2ab   :  { %529 = vst.msk [vmem:[%s883_s7 + $0x20] sm:$0xff] %vm524_vm3, %v687_v57 }

</bundles_post_ra>
